<compile_context>
chip_gen: v6e
topology: v6e:2x2x1
jax: 0.10.0
libtpu: 0.0.40
codegen_flags: <defaults>
</compile_context>

<pallas_src>
import functools

import jax
import jax.numpy as jnp
from jax import lax
from jax.experimental import pallas as pl
from jax.experimental.pallas import tpu as pltpu


_LANE = 128
_BLOCK_BYTES_CAP = 8 * 1024 * 1024   # per-buffer cap; 2x in + 2x out buffers ~ 32 MiB
_VMEM_LIMIT = 48 * 1024 * 1024       # leaves headroom on v7x's 64 MiB/TC


# ---------------------------------------------------------------------------
# shared in-kernel helpers
# ---------------------------------------------------------------------------
def _lane_sum(x):
    """Sum over the last (lane) axis.

    When the lane extent is a modest multiple of 128, tree-add the 128-wide
    chunks on the VPU first and finish with a single XLU lane reduce."""
    hw = x.shape[-1]
    nchunk = hw // _LANE
    if hw % _LANE == 0 and 1 < nchunk <= 64:
        chunks = [x[..., k * _LANE:(k + 1) * _LANE] for k in range(nchunk)]
        while len(chunks) > 1:
            nxt = [chunks[i] + chunks[i + 1] for i in range(0, len(chunks) - 1, 2)]
            if len(chunks) % 2:
                nxt.append(chunks[-1])
            chunks = nxt
        return jnp.sum(chunks[0], axis=-1)
    return jnp.sum(x, axis=-1)


def _se_gate(pooled, w1, b1, w2, b2):
    """Squeeze-excite MLP: sigmoid(W2 @ relu(W1 @ pooled + b1) + b2).

    pooled: (Nb, C); w1: (Cr, C); b1: (1, Cr); w2: (C, Cr); b2: (1, C)."""
    nb = pooled.shape[0]
    if nb >= 128:
        # Batched LHS wide enough to be worth the MXU.
        h = lax.dot_general(pooled, w1, (((1,), (1,)), ((), ())),
                            preferred_element_type=jnp.float32) + b1
        h = jnp.maximum(h, 0.0)                                        # (Nb, Cr)
        g = lax.dot_general(h, w2, (((1,), (1,)), ((), ())),
                            preferred_element_type=jnp.float32) + b2
    else:
        # Tiny matvec: broadcast-multiply + reduce on the VPU.
        h = jnp.sum(pooled[:, None, :] * w1[None, :, :], axis=-1) + b1
        h = jnp.maximum(h, 0.0)                                        # (Nb, Cr)
        g = jnp.sum(h[:, None, :] * w2[None, :, :], axis=-1) + b2
    return jax.nn.sigmoid(g)                                           # (Nb, C)


# ---------------------------------------------------------------------------
# Path A: single-pass kernel (whole image(s) in one block)
# ---------------------------------------------------------------------------
def ca_kernel(x_ref, w1_ref, b1_ref, w2_ref, b2_ref, o_ref):
    x = x_ref[...]                                     # (Nb, C, HW) f32
    hw = x.shape[-1]

    pooled = _lane_sum(x) * (1.0 / hw)                 # (Nb, C)
    gate = _se_gate(pooled, w1_ref[...], b1_ref[...], w2_ref[...], b2_ref[...])

    # channel-wise rescale, broadcast over the spatial (lane) axis
    o_ref[...] = x * gate[:, :, None]


# ---------------------------------------------------------------------------
# Path B pass 1: spatially tiled pool + gate (accumulator over HW axis)
# ---------------------------------------------------------------------------
def pool_gate_kernel(x_ref, w1_ref, b1_ref, w2_ref, b2_ref, gate_ref, acc_ref,
                     *, hw_total):
    h = pl.program_id(1)

    @pl.when(h == 0)
    def _():
        acc_ref[...] = jnp.zeros_like(acc_ref)

    acc_ref[...] += _lane_sum(x_ref[...])              # (1, C) partial spatial sum

    @pl.when(h == pl.num_programs(1) - 1)
    def _():
        pooled = acc_ref[...] * (1.0 / hw_total)       # (1, C)
        gate = _se_gate(pooled, w1_ref[...], b1_ref[...], w2_ref[...], b2_ref[...])
        gate_ref[...] = gate[:, :, None]               # (1, C, 1)


# ---------------------------------------------------------------------------
# Path B pass 2: lane-broadcast rescale
# ---------------------------------------------------------------------------
def rescale_kernel(x_ref, gate_ref, o_ref):
    o_ref[...] = x_ref[...] * gate_ref[...]            # (1,C,tile) * (1,C,1)


# ---------------------------------------------------------------------------
# block-size heuristics
# ---------------------------------------------------------------------------
def _choose_batch_block(n, c, hw, itemsize, cap):
    """Largest divisor Nb of N whose (Nb, C, HW) block fits the VMEM budget,
    keeping at least 2 grid steps (megacore / 2-TC chips) whenever N >= 2."""
    best = 1
    for nb in range(1, n + 1):
        if n % nb != 0:
            continue
        if nb * c * hw * itemsize > cap:
            continue
        if n >= 2 and nb > 1 and (n // nb) < 2:
            continue
        best = nb
    return best


def _choose_hw_tile(hw_padded, c, itemsize, cap):
    """Largest multiple-of-128 divisor of hw_padded whose (1, C, tile) fits cap."""
    best = _LANE
    t = _LANE
    while t <= hw_padded:
        if hw_padded % t == 0 and c * t * itemsize <= cap:
            best = t
        t += _LANE
    return best


# ---------------------------------------------------------------------------
# wrapper
# ---------------------------------------------------------------------------
def ca_layer(x, w1, b1, w2, b2, *, block_bytes_cap=_BLOCK_BYTES_CAP):
    """x: (N, C, H, W) f32. w1: (C//r, C), b1: (C//r,), w2: (C, C//r), b2: (C,)."""
    N, C, H, W = x.shape
    Cr = w1.shape[0]
    HW = H * W
    itemsize = x.dtype.itemsize

    x2 = x.reshape(N, C, HW)       # trailing-dim merge: free reshape
    b1r = b1.reshape(1, Cr)
    b2r = b2.reshape(1, C)

    single_image_bytes = C * HW * itemsize

    if single_image_bytes <= block_bytes_cap:
        # ---------------- Path A: one-pass, x read from HBM exactly once ----
        Nb = _choose_batch_block(N, C, HW, itemsize, block_bytes_cap)
        out = pl.pallas_call(
            ca_kernel,
            out_shape=jax.ShapeDtypeStruct((N, C, HW), x.dtype),
            grid_spec=pltpu.PrefetchScalarGridSpec(
                num_scalar_prefetch=0,
                grid=(N // Nb,),
                in_specs=[
                    pl.BlockSpec((Nb, C, HW), lambda n: (n, 0, 0)),
                    pl.BlockSpec((Cr, C), lambda n: (0, 0)),
                    pl.BlockSpec((1, Cr), lambda n: (0, 0)),
                    pl.BlockSpec((C, Cr), lambda n: (0, 0)),
                    pl.BlockSpec((1, C), lambda n: (0, 0)),
                ],
                out_specs=pl.BlockSpec((Nb, C, HW), lambda n: (n, 0, 0)),
            ),
            compiler_params=pltpu.CompilerParams(
                dimension_semantics=("parallel",),
                vmem_limit_bytes=_VMEM_LIMIT,
            ),
        )(x2, w1, b1r, w2, b2r)
        return out.reshape(N, C, H, W)

    # ---------------- Path B: two-pass, spatially tiled ----------------------
    # Pad HW to a multiple of 128 (zeros don't perturb the pooled mean since we
    # divide by the true HW); slice the padding back off at the end.
    HWp = ((HW + _LANE - 1) // _LANE) * _LANE
    x2p = x2 if HWp == HW else jnp.pad(x2, ((0, 0), (0, 0), (0, HWp - HW)))
    hw_tile = _choose_hw_tile(HWp, C, itemsize, block_bytes_cap)
    n_hw = HWp // hw_tile

    # Pass 1: pooled sums accumulate across the HW axis; last step emits gate.
    gate = pl.pallas_call(
        functools.partial(pool_gate_kernel, hw_total=HW),
        out_shape=jax.ShapeDtypeStruct((N, C, 1), jnp.float32),
        grid_spec=pltpu.PrefetchScalarGridSpec(
            num_scalar_prefetch=0,
            grid=(N, n_hw),
            in_specs=[
                pl.BlockSpec((1, C, hw_tile), lambda n, h: (n, 0, h)),
                pl.BlockSpec((Cr, C), lambda n, h: (0, 0)),
                pl.BlockSpec((1, Cr), lambda n, h: (0, 0)),
                pl.BlockSpec((C, Cr), lambda n, h: (0, 0)),
                pl.BlockSpec((1, C), lambda n, h: (0, 0)),
            ],
            out_specs=pl.BlockSpec((1, C, 1), lambda n, h: (n, 0, 0)),
            scratch_shapes=[pltpu.VMEM((1, C), jnp.float32)],
        ),
        compiler_params=pltpu.CompilerParams(
            dimension_semantics=("parallel", "arbitrary"),
            vmem_limit_bytes=_VMEM_LIMIT,
        ),
    )(x2p, w1, b1r, w2, b2r)

    # Pass 2: channel-wise rescale, fully parallel over (N, HW tiles).
    out = pl.pallas_call(
        rescale_kernel,
        out_shape=jax.ShapeDtypeStruct((N, C, HWp), x.dtype),
        grid_spec=pltpu.PrefetchScalarGridSpec(
            num_scalar_prefetch=0,
            grid=(N, n_hw),
            in_specs=[
                pl.BlockSpec((1, C, hw_tile), lambda n, h: (n, 0, h)),
                pl.BlockSpec((1, C, 1), lambda n, h: (n, 0, 0)),
            ],
            out_specs=pl.BlockSpec((1, C, hw_tile), lambda n, h: (n, 0, h)),
        ),
        compiler_params=pltpu.CompilerParams(
            dimension_semantics=("parallel", "parallel"),
            vmem_limit_bytes=_VMEM_LIMIT,
        ),
    )(x2p, gate)

    if HWp != HW:
        out = out[:, :, :HW]
    return out.reshape(N, C, H, W)


# ---------------------------------------------------------------------------
# pure-JAX reference (matches the PyTorch module semantics)
# ---------------------------------------------------------------------------
def ca_layer_ref(x, w1, b1, w2, b2):
    y = jnp.mean(x, axis=(2, 3), keepdims=True)                    # (N,C,1,1)
    y = jnp.einsum("oc,nchw->nohw", w1, y) + b1[None, :, None, None]
    y = jnp.maximum(y, 0.0)
    y = jnp.einsum("oc,nchw->nohw", w2, y) + b2[None, :, None, None]
    y = jax.nn.sigmoid(y)
    return x * y


if __name__ == "__main__":
    key = jax.random.PRNGKey(0)
    N, C, reduction = 2, 8, 4
    Cr = C // reduction

    k_x, k_w1, k_b1, k_w2, k_b2, k_x2 = jax.random.split(key, 6)
    # deterministic synthetic weights (Conv2d 1x1 kernels squeezed to matrices)
    w1 = jax.random.normal(k_w1, (Cr, C), dtype=jnp.float32) * 0.1
    b1 = jax.random.normal(k_b1, (Cr,), dtype=jnp.float32) * 0.1
    w2 = jax.random.normal(k_w2, (C, Cr), dtype=jnp.float32) * 0.1
    b2 = jax.random.normal(k_b2, (C,), dtype=jnp.float32) * 0.1

    # ---- test Path A (single-pass) at a small shape -------------------------
    H = W = 16
    x = jax.random.normal(k_x, (N, C, H, W), dtype=jnp.float32)
    out = jax.block_until_ready(ca_layer(x, w1, b1, w2, b2))
    ref = ca_layer_ref(x, w1, b1, w2, b2)
    assert out.shape == (N, C, H, W)
    assert jnp.allclose(out, ref, atol=1e-5, rtol=1e-5), "Path A mismatch vs reference"

    # ---- test Path B (two-pass, spatially tiled) by forcing a tiny cap ------
    H2 = W2 = 32
    xb = jax.random.normal(k_x2, (N, C, H2, W2), dtype=jnp.float32)
    out_b = jax.block_until_ready(
        ca_layer(xb, w1, b1, w2, b2, block_bytes_cap=16 * 1024))
    ref_b = ca_layer_ref(xb, w1, b1, w2, b2)
    assert out_b.shape == (N, C, H2, W2)
    assert jnp.allclose(out_b, ref_b, atol=1e-5, rtol=1e-5), "Path B mismatch vs reference"

    print("KERNEL_OK")
</pallas_src>

<mosaic_0001>
module attributes {stable_mosaic.version = 11 : i64} {
  func.func @ca_kernel(%arg0: i32, %arg1: memref<1x8x256xf32, #tpu.memory_space<vmem>>, %arg2: memref<2x8xf32, #tpu.memory_space<vmem>>, %arg3: memref<1x2xf32, #tpu.memory_space<vmem>>, %arg4: memref<8x2xf32, #tpu.memory_space<vmem>>, %arg5: memref<1x8xf32, #tpu.memory_space<vmem>>, %arg6: memref<1x8x256xf32, #tpu.memory_space<vmem>>) attributes {dimension_semantics = [#tpu.dimension_semantics<parallel>], iteration_bounds = array<i64: 2>, scalar_prefetch = 0 : i64, scratch_operands = 0 : i64, tpu.core_type = #tpu.core_type<tc>, window_params = [{transform_indices = @transform_0, window_bounds = array<i64: 1, 8, 256>}, {pipeline_mode = #tpu.pipeline_mode<synchronous>, transform_indices = @transform_1, window_bounds = array<i64: 2, 8>}, {pipeline_mode = #tpu.pipeline_mode<synchronous>, transform_indices = @transform_2, window_bounds = array<i64: 1, 2>}, {pipeline_mode = #tpu.pipeline_mode<synchronous>, transform_indices = @transform_3, window_bounds = array<i64: 8, 2>}, {pipeline_mode = #tpu.pipeline_mode<synchronous>, transform_indices = @transform_4, window_bounds = array<i64: 1, 8>}, {transform_indices = @transform_5, window_bounds = array<i64: 1, 8, 256>}]} {
    %c0 = arith.constant 0 : index
    %c0_0 = arith.constant 0 : index
    %c0_1 = arith.constant 0 : index
    %0 = vector.load %arg1[%c0, %c0_0, %c0_1] : memref<1x8x256xf32, #tpu.memory_space<vmem>>, vector<1x8x256xf32>
    %1 = vector.extract_strided_slice %0 {offsets = [0, 0, 0], sizes = [1, 8, 128], strides = [1, 1, 1]} : vector<1x8x256xf32> to vector<1x8x128xf32>
    %2 = vector.extract_strided_slice %0 {offsets = [0, 0, 128], sizes = [1, 8, 128], strides = [1, 1, 1]} : vector<1x8x256xf32> to vector<1x8x128xf32>
    %3 = arith.addf %1, %2 : vector<1x8x128xf32>
    %cst = arith.constant dense<0.000000e+00> : vector<1x8xf32>
    %4 = vector.multi_reduction <add>, %3, %cst [2] : vector<1x8x128xf32> to vector<1x8xf32>
    %cst_2 = arith.constant 3.906250e-03 : f32
    %5 = vector.broadcast %cst_2 : f32 to vector<1x8xf32>
    %6 = arith.mulf %4, %5 : vector<1x8xf32>
    %c0_3 = arith.constant 0 : index
    %c0_4 = arith.constant 0 : index
    %7 = vector.load %arg2[%c0_3, %c0_4] : memref<2x8xf32, #tpu.memory_space<vmem>>, vector<2x8xf32>
    %c0_5 = arith.constant 0 : index
    %c0_6 = arith.constant 0 : index
    %8 = vector.load %arg3[%c0_5, %c0_6] : memref<1x2xf32, #tpu.memory_space<vmem>>, vector<1x2xf32>
    %c0_7 = arith.constant 0 : index
    %c0_8 = arith.constant 0 : index
    %9 = vector.load %arg4[%c0_7, %c0_8] : memref<8x2xf32, #tpu.memory_space<vmem>>, vector<8x2xf32>
    %c0_9 = arith.constant 0 : index
    %c0_10 = arith.constant 0 : index
    %10 = vector.load %arg5[%c0_9, %c0_10] : memref<1x8xf32, #tpu.memory_space<vmem>>, vector<1x8xf32>
    %11 = vector.shape_cast %6 : vector<1x8xf32> to vector<1x1x8xf32>
    %12 = vector.shape_cast %7 : vector<2x8xf32> to vector<1x2x8xf32>
    %13 = vector.broadcast %11 : vector<1x1x8xf32> to vector<1x2x8xf32>
    %14 = arith.mulf %13, %12 : vector<1x2x8xf32>
    %cst_11 = arith.constant dense<0.000000e+00> : vector<1x2xf32>
    %15 = vector.multi_reduction <add>, %14, %cst_11 [2] : vector<1x2x8xf32> to vector<1x2xf32>
    %16 = arith.addf %15, %8 : vector<1x2xf32>
    %cst_12 = arith.constant 0.000000e+00 : f32
    %17 = vector.broadcast %cst_12 : f32 to vector<1x2xf32>
    %18 = arith.maximumf %16, %17 : vector<1x2xf32>
    %19 = vector.shape_cast %18 : vector<1x2xf32> to vector<1x1x2xf32>
    %20 = vector.shape_cast %9 : vector<8x2xf32> to vector<1x8x2xf32>
    %21 = vector.broadcast %19 : vector<1x1x2xf32> to vector<1x8x2xf32>
    %22 = arith.mulf %21, %20 : vector<1x8x2xf32>
    %cst_13 = arith.constant dense<0.000000e+00> : vector<1x8xf32>
    %23 = vector.multi_reduction <add>, %22, %cst_13 [2] : vector<1x8x2xf32> to vector<1x8xf32>
    %24 = arith.addf %23, %10 : vector<1x8xf32>
    %25 = arith.negf %24 : vector<1x8xf32>
    %26 = math.exp %25 : vector<1x8xf32>
    %cst_14 = arith.constant 1.000000e+00 : f32
    %27 = vector.broadcast %cst_14 : f32 to vector<1x8xf32>
    %28 = arith.addf %27, %26 : vector<1x8xf32>
    %29 = arith.divf %27, %28 : vector<1x8xf32>
    %30 = vector.shape_cast %29 : vector<1x8xf32> to vector<1x8x1xf32>
    %31 = vector.broadcast %30 : vector<1x8x1xf32> to vector<1x8x256xf32>
    %32 = arith.mulf %0, %31 : vector<1x8x256xf32>
    %c0_15 = arith.constant 0 : index
    %c0_16 = arith.constant 0 : index
    %c0_17 = arith.constant 0 : index
    %33 = vector.load %arg6[%c0_15, %c0_16, %c0_17] : memref<1x8x256xf32, #tpu.memory_space<vmem>>, vector<1x8x256xf32>
    tpu.vector_store %arg6[%c0_15, %c0_16, %c0_17], %32 {strides = array<i32>} : memref<1x8x256xf32, #tpu.memory_space<vmem>>, vector<1x8x256xf32>,
    return
  }
  func.func @transform_0(%arg0: i32) -> (i32, i32, i32) {
    %c0_i32 = arith.constant 0 : i32
    %c0_i32_0 = arith.constant 0 : i32
    %c0_i32_1 = arith.constant 0 : i32
    return %arg0, %c0_i32, %c0_i32_0 : i32, i32, i32
  }
  func.func @transform_1(%arg0: i32) -> (i32, i32) {
    %c0_i32 = arith.constant 0 : i32
    %c0_i32_0 = arith.constant 0 : i32
    %c0_i32_1 = arith.constant 0 : i32
    return %c0_i32, %c0_i32_0 : i32, i32
  }
  func.func @transform_2(%arg0: i32) -> (i32, i32) {
    %c0_i32 = arith.constant 0 : i32
    %c0_i32_0 = arith.constant 0 : i32
    %c0_i32_1 = arith.constant 0 : i32
    return %c0_i32, %c0_i32_0 : i32, i32
  }
  func.func @transform_3(%arg0: i32) -> (i32, i32) {
    %c0_i32 = arith.constant 0 : i32
    %c0_i32_0 = arith.constant 0 : i32
    %c0_i32_1 = arith.constant 0 : i32
    return %c0_i32, %c0_i32_0 : i32, i32
  }
  func.func @transform_4(%arg0: i32) -> (i32, i32) {
    %c0_i32 = arith.constant 0 : i32
    %c0_i32_0 = arith.constant 0 : i32
    %c0_i32_1 = arith.constant 0 : i32
    return %c0_i32, %c0_i32_0 : i32, i32
  }
  func.func @transform_5(%arg0: i32) -> (i32, i32, i32) {
    %c0_i32 = arith.constant 0 : i32
    %c0_i32_0 = arith.constant 0 : i32
    %c0_i32_1 = arith.constant 0 : i32
    return %arg0, %c0_i32, %c0_i32_0 : i32, i32, i32
  }
}

</mosaic_0001>

<bundles_post_ra>
// kernel: tpu_custom_call.1
= control target key start
LH: loop header
LB: loop body
LE: loop exit
PB: predicated region body
PF: predicated region fallthrough
CT: control target
= control target key end

     0   :  { %10 = vsyncpa [#allocation3], 0  ;;  %s955_s0 = inlined_call_operand.hbm [shape: f32[2,8,256], index: 0, kind: input, shape index: {}]   ;;  %s956_s1 = inlined_call_operand.vmem [shape: f32[2,8], index: 1, kind: input, shape index: {}]   ;;  %s957_s2 = inlined_call_operand.vmem [shape: f32[1,2], index: 2, kind: input, shape index: {}]   ;;  %s958_s3 = inlined_call_operand.vmem [shape: f32[8,2], index: 3, kind: input, shape index: {}]   ;;  %s959_s4 = inlined_call_operand.vmem [shape: f32[1,8], index: 4, kind: input, shape index: {}]   ;;  %s960_s5 = inlined_call_operand.hbm [shape: f32[2,8,256], index: 5, kind: output, shape index: {}]  }
   0x1   :  { %12 = vsyncpa [#allocation3 + $0x1], 0 }
   0x2   :  { %13 = vsyncpa [#allocation4], 0 }
   0x3   :  { %15 = vsyncpa [#allocation4 + $0x1], 0  ;;  %s770_s18 = smov 0   ;;  %s772_s19 = smov 0  }
   0x4   :  { %s774_s20 = smov 0   ;;  %s776_s21 = smov 0  }
   0x5 LB: > { %s791_s22 = sadd.s32 4294967295, %s735_s21   ;;  %s571_s23 = sadd.s32 4294967294, %s735_s21   ;;  %s735_s21 = sphi %s776_s21, %s977_s21   ;;  %s731_s20 = sphi %s774_s20, %s976_s20   ;;  %s727_s19 = sphi %s772_s19, %s975_s19   ;;  %s723_s18 = sphi %s770_s18, %s974_s18  }
   0x6   : > { %s795_s24 = sadd.s32 1, %s735_s21   ;;  %s28_s25 = sadd.s32 1, %s731_s20 }
   0x7   : > { %s25_s26 = ssub.s32 %s735_s21, %s795_s24  ;;  %p35_p0 = scmp.ne.s32.totalorder %s731_s20, %s727_s19 }
   0x8   : > { %p26_p1 = scmp.eq.s32.totalorder %s25_s26, 0  ;;  %p36_p2 = scmp.eq.s32.totalorder %s735_s21, 0 }
   0x9   : > { %p41_p3 = scmp.ne.s32.totalorder %s727_s19, %s723_s18  ;;  %p42_p4 = scmp.eq.s32.totalorder %s791_s22, 0 }
   0xa   : > { %s807_s27 = scalar_select %p26_p1, %s731_s20, %s28_s25  }
   0xb   : > { %p809_p5 = por %p36_p2, %p35_p0  ;;  %p813_p6 = por %p42_p4, %p41_p3 }
   0xc   : > { %p149_p7 = scmp.eq.s32.totalorder %s791_s22, 1  ;;  %p155_p8 = scmp.eq.s32.totalorder %s571_s23, 1 }
   0xd   : > { %s964_s29 = scalar_select %p813_p6, 1, 0 }
   0xe   : > { %p602_p10 = scmp.lt.s32.totalorder %s735_s21, 2  ;;  %p820_p11 = por %p149_p7, %p35_p0 }
   0xf   : > { %p824_p12 = por %p155_p8, %p41_p3  ;;  %s187_s7 = sand.u32 1, %s731_s20  }
  0x10   : > { %s965_s30 = scalar_select %p820_p11, 1, 0 }
  0x11   : > { %s966_s6 = scalar_select %p824_p12, 1, 0 }
  0x12   : > { %s588_s8 = sshll.u32 %s735_s21, 8  ;;  %s574_s9 = sshll.u32 %s187_s7, 4 }
  0x13   : > { %s833_s12 = scalar_lea.hbm %s955_s0, %s588_s8  ;;  %s191_s13 = scalar_lea.vmem [#allocation2], %s574_s9 }
  0x14   : > { %s199_s14 = sshll.u32 %s191_s13, 4  ;;  %p837_p13 = pnand %p602_p10, %p809_p5  ;;  %s841_s14 = int_to_ptr.vmem [resolvable:$true] %s199_s14 }
  0x15   : > { %s188_s16 = scalar_lea.sflag [#allocation3], %s187_s7  ;;  %s643_s17 = scalar_lea.hbm %s833_s12, 256 }
  0x16   : > { %p644_p2 = scmp.ne.s32.totalorder %s833_s12, %s643_s17  ;;  %p645_p3 = pneg %p837_p13 }
  0x17   : > { %s648_s26 = scalar_lea.hbm %s955_s0, 512  ;;  %p649_p5 = scmp.lt.s32.totalorder %s833_s12, %s955_s0 }
  0x18   : > { %p646_p4 = pnand %p645_p3, %p644_p2  ;;  %p650_p8 = scmp.lt.s32.totalorder %s648_s26, %s643_s17 }
  0x1a   : > { %p647_p7 = pneg %p646_p4  ;;  %p651_p10 = por %p650_p8, %p649_p5 }
  0x1c   : > { %p652_p9 = pnand %p651_p10, %p647_p7 }
  0x1e   : > { %655 = shalt.err (!%p652_p9)
}
  0x1f   : > { %s656_s7 = scalar_lea.vmem %s841_s14, 256  ;;  %s737_s9 = smov [#allocation2]  }
  0x20   : > { %p657_p0 = scmp.ne.s32.totalorder %s841_s14, %s656_s7  ;;  %s661_s10 = sshll.u32 %s737_s9, 4  ;;  %s662_s10 = int_to_ptr.vmem [resolvable:$false] %s661_s10 }
  0x21   : > { %s663_s11 = scalar_lea.vmem %s662_s10, 512  ;;  %p664_p4 = scmp.lt.s32.totalorder %s841_s14, %s662_s10 }
  0x22   : > { %p659_p1 = pnand %p657_p0, %p645_p3  ;;  %p665_p12 = scmp.lt.s32.totalorder %s663_s11, %s656_s7 }
  0x24   : > { %p660_p2 = pneg %p659_p1  ;;  %p666_p11 = por %p665_p12, %p664_p4 }
  0x26   : > { %p667_p6 = pnand %p666_p11, %p660_p2 }
  0x28   : > { %670 = shalt.err (!%p667_p6)
}
  0x29   : > { %597 = dma.hbm_to_vmem [thread:$0]  (!%p837_p13), %s833_s12, 256, %s841_s14, %s188_s16  }
  0x2a   : > { %p968_p9 = scmp.lt.s32.totalorder %s735_s21, 3  ;;  %p969_p7 = scmp.ge.s32.totalorder %s735_s21, 1 }
  0x2c   : > { %p205_p0 = pnand %p969_p7, %p968_p9 }
  0x2d   : > { %s868_s13 = sand.u32 (!%p205_p0), 1, %s727_s19   ;;  %p970_p6 = scmp.ne.s32.totalorder (!%p205_p0), %s964_s29, 0 }
  0x2e   : > { %208 = sbr.rel (%p205_p0) target bundleno = 927 (0x39f), region = 40  ;;  %s578_s17 = sshll.u32 (!%p205_p0), %s868_s13, 4 }
  0x2f   : > { %s211_s23 = scalar_lea.sflag (!%p205_p0), [#allocation3], %s868_s13  ;;  %s214_s15 = scalar_lea.vmem (!%p205_p0), [#allocation2], %s578_s17 }
  0x33   : > { %714 = dma.done.wait (%p970_p6), %s211_s23, 256  }
  0x34   : > { %716 = vsyncadd (%p970_p6), %s211_s23, 4294967040  ;;  %v252_v0 = vlaneseq  ;;  %v878_v3 = vld [vmem:[%s214_s15] sm:$0xff]  ;;  %v880_v4 = vld [vmem:[%s214_s15 + $0x8] sm:$0xff]  ;;  %v738_v9 = vmov 0   ;;  %vm288_vm0 = vcmask 1041409   ;;  %vm291_vm1 = vcmask 58368  }
  0x35   : > { %v247_v5 = vld [vmem:[%s956_s1] sm:$0x3]  ;;  %v243_v6 = vadd.f32 %v880_v4, %v878_v3  ;;  %637 = vset.pattern.permute.xlu1 %v738_v9  ;;  %638 = vset.pattern.permute.xlu0 %v738_v9  ;;  %vm444_vm2 = vcmask 1042434   ;;  %vm446_vm3 = vcmask 1043459   ;;  %vm448_vm4 = vcmask 1044484   ;;  %s589_s7 = sshll.u32 %s791_s22, 8 }
  0x36   : > { %v253_v1 = vshrl.u32 %v252_v0, 7  ;;  %v580_v16 = vld [vmem:[%s957_s2] ss:$0 sm:$0xff]  ;;  %v279_v31 = vand.u32 127, %v252_v0  ;;  %vm450_vm5 = vcmask 1045509   ;;  %vm452_vm6 = vcmask 1046534   ;;  %s918_s15 = scalar_lea.hbm %s960_s5, %s589_s7 }
  0x37   : > { %244 = vadd.xlane.f32.xlu0 %v243_v6  ;;  %v249_v18 = vld [vmem:[%s958_s3] sm:$0xff]  ;;  %vm454_vm7 = vcmask 1047559   ;;  %vm457_vm8 = vcmask 15360   ;;  %s240_s9 = scalar_lea.vmem [#allocation5], %s578_s17  ;;  %s487_s12 = scalar_lea.sflag [#allocation4], %s868_s13 }
  0x38   : > { %v261_v2 = vsub.s32 1, %v253_v1  ;;  %v254_v8 = vsub.s32 0, %v253_v1  ;;  %v323_v21 = vsub.s32 2, %v253_v1  ;;  %v330_v23 = vsub.s32 3, %v253_v1  ;;  %v581_v61 = vld [vmem:[%s959_s4] ss:$0 sm:$0xff] }
  0x39   : > { %v337_v25 = vsub.s32 4, %v253_v1  ;;  %v351_v27 = vsub.s32 6, %v253_v1  ;;  %v358_v29 = vsub.s32 7, %v253_v1  ;;  %v893_v33 = vsub.s32 %v279_v31, %v253_v1  ;;  %s501_s10 = sshll.u32 %s240_s9, 4  ;;  %p971_p12 = scmp.ne.s32.totalorder %s965_s30, 0  ;;  %s502_s10 = int_to_ptr.vmem [resolvable:$true] %s501_s10 }
  0x3a   : > { %v262_v7 = vrot.slane %v247_v5, %v261_v2  ;;  %v255_v10 = vrot.slane %v247_v5, %v254_v8  ;;  %v310_v19 = vrot.slane %v249_v18, %v254_v8  ;;  %v317_v20 = vrot.slane %v249_v18, %v261_v2  ;;  %s671_s14 = scalar_lea.vmem %s502_s10, 256  ;;  %s739_s22 = smov [#allocation5]  }
  0x3b   : > { %v324_v22 = vrot.slane %v249_v18, %v323_v21  ;;  %v331_v24 = vrot.slane %v249_v18, %v330_v23  ;;  %v338_v26 = vrot.slane %v249_v18, %v337_v25  ;;  %v352_v28 = vrot.slane %v249_v18, %v351_v27  ;;  %p672_p11 = scmp.ne.s32.totalorder %s502_s10, %s671_s14  ;;  %s675_s17 = sshll.u32 %s739_s22, 4  ;;  %s676_s17 = int_to_ptr.vmem [resolvable:$false] %s675_s17 }
  0x3c   : > { %264 = vbcast.lane.b32.xlu1 %v262_v7, 256  ;;  %v359_v30 = vrot.slane %v249_v18, %v358_v29  ;;  %v344_v39 = vsub.s32 5, %v253_v1  ;;  %s677_s29 = scalar_lea.vmem %s676_s17, 512  ;;  %p678_p3 = scmp.lt.s32.totalorder %s502_s10, %s676_s17 }
  0x3d   : > { %p673_p13 = pnand %p672_p11, %p971_p12  ;;  %p679_p5 = scmp.lt.s32.totalorder %s677_s29, %s671_s14 }
  0x3e   : > { %v345_v40 = vrot.slane %v249_v18, %v344_v39 }
  0x3f   : > { %p674_p1 = pneg %p673_p13  ;;  %p680_p8 = por %p679_p5, %p678_p3 }
  0x41   : > { %p681_p10 = pnand %p680_p8, %p674_p1 }
  0x4d   : > { %257 = vbcast.lane.b32.xlu0 %v255_v10, 256 }
  0x51   : > { %301 = vbcast.lane.b32.xlu0 %v580_v16, 256 }
  0x55   : > { %312 = vbcast.lane.b32.xlu0 %v310_v19, 256 }
  0x59   : > { %319 = vbcast.lane.b32.xlu0 %v317_v20, 256 }
  0x5d   : > { %326 = vbcast.lane.b32.xlu0 %v324_v22, 256 }
  0x61   : > { %333 = vbcast.lane.b32.xlu0 %v331_v24, 256 }
  0x65   : > { %340 = vbcast.lane.b32.xlu0 %v338_v26, 256 }
  0x69   : > { %354 = vbcast.lane.b32.xlu0 %v352_v28, 256 }
  0x6d   : > { %361 = vbcast.lane.b32.xlu0 %v359_v30, 256 }
  0xae   : > { %v265_v15 = vpop.permute.xlu1 %264 }
  0xc0   : > { %v245_v11 = vpop.xlane.xlu0 %244 }
  0xc1   : > { %v246_v12 = vmul.f32 0.00390625, %v245_v11 }
  0xc3   : > { %v269_v17 = vmul.f32 %v265_v15, %v246_v12 }
  0xc4   : > { %v258_v13 = vpop.permute.xlu0 %257 }
  0xc5   : > { %v268_v14 = vmul.f32 %v258_v13, %v246_v12 }
  0xc7   : > { %273 = vperm.xlu1 %637, %v268_v14  }
  0xc8   : > { %v302_v41 = vpop.permute.xlu0 %301 }
  0xcb   : > { %276 = vperm.xlu1 %637, %v269_v17  }
  0xcc   : > { %v313_v42 = vpop.permute.xlu0 %312 }
  0xd0   : > { %v320_v43 = vpop.permute.xlu0 %319 }
  0xd4   : > { %v327_v44 = vpop.permute.xlu0 %326 }
  0xd8   : > { %v334_v45 = vpop.permute.xlu0 %333 }
  0xdc   : > { %v341_v48 = vpop.permute.xlu0 %340 }
  0xe0   : > { %v355_v52 = vpop.permute.xlu0 %354 }
  0xe4   : > { %v362_v58 = vpop.permute.xlu0 %361 }
 0x142   : > { %v274_v32 = vpop.permute.xlu1 %273 }
 0x143   : > { %v283_v35 = vrot.slane %v274_v32, %v893_v33 }
 0x146   : > { %v277_v34 = vpop.permute.xlu1 %276 }
 0x147   : > { %v287_v36 = vrot.slane %v277_v34, %v893_v33 }
 0x149   : > { %v289_v37 = vsel %vm288_vm0, %v287_v36, %v283_v35 }
 0x14a   : > { %v292_v38 = vsel %vm291_vm1, %v289_v37, 0.0 }
 0x14b   : > { %293 = vadd.xlane.f32.xlu1 %v292_v38 }
 0x15c   : > { %347 = vbcast.lane.b32.xlu1 %v345_v40, 256 }
 0x1d4   : > { %v294_v46 = vpop.xlane.xlu1 %293 }
 0x1d5   : > { %v304_v47 = vadd.f32 %v302_v41, %v294_v46 }
 0x1d7   : > { %v305_v49 = vmax.f32 %v304_v47, 0.0 }
 0x1d8   : > { %v348_v55 = vpop.permute.xlu1 %347 }
 0x1d9   : > { %v371_v50 = vmul.f32 %v313_v42, %v305_v49  ;;  %v372_v51 = vmul.f32 %v320_v43, %v305_v49  ;;  %v373_v53 = vmul.f32 %v327_v44, %v305_v49  ;;  %v374_v54 = vmul.f32 %v334_v45, %v305_v49 }
 0x1da   : > { %v375_v56 = vmul.f32 %v341_v48, %v305_v49  ;;  %v376_v57 = vmul.f32 %v348_v55, %v305_v49  ;;  %v377_v59 = vmul.f32 %v355_v52, %v305_v49  ;;  %v378_v60 = vmul.f32 %v362_v58, %v305_v49 }
 0x1db   : > { %388 = vperm.xlu0 %638, %v371_v50   ;;  %391 = vperm.xlu1 %637, %v372_v51  }
 0x1df   : > { %394 = vperm.xlu0 %638, %v373_v53   ;;  %397 = vperm.xlu1 %637, %v374_v54  }
 0x1e3   : > { %400 = vperm.xlu0 %638, %v375_v56   ;;  %403 = vperm.xlu1 %637, %v376_v57  }
 0x1e7   : > { %406 = vperm.xlu0 %638, %v377_v59   ;;  %409 = vperm.xlu1 %637, %v378_v60  }
 0x1eb   : > { %467 = vbcast.lane.b32.xlu1 %v581_v61, 256 }
 0x256   : > { %v389_v62 = vpop.permute.xlu0 %388  ;;  %v392_v63 = vpop.permute.xlu1 %391 }
 0x257   : > { %v418_v0 = vrot.slane %v392_v63, %v893_v33  ;;  %v414_v1 = vrot.slane %v389_v62, %v893_v33 }
 0x259   : > { %v443_v7 = vsel %vm288_vm0, %v418_v0, %v414_v1 }
 0x25a   : > { %v395_v2 = vpop.permute.xlu0 %394  ;;  %v398_v5 = vpop.permute.xlu1 %397 }
 0x25b   : > { %v422_v6 = vrot.slane %v395_v2, %v893_v33  ;;  %v426_v8 = vrot.slane %v398_v5, %v893_v33 }
 0x25d   : > { %v445_v9 = vsel %vm444_vm2, %v422_v6, %v443_v7 }
 0x25e   : > { %v401_v10 = vpop.permute.xlu0 %400  ;;  %v404_v11 = vpop.permute.xlu1 %403  ;;  %v447_v14 = vsel %vm446_vm3, %v426_v8, %v445_v9 }
 0x25f   : > { %v430_v12 = vrot.slane %v401_v10, %v893_v33  ;;  %v434_v13 = vrot.slane %v404_v11, %v893_v33 }
 0x261   : > { %v449_v15 = vsel %vm448_vm4, %v430_v12, %v447_v14 }
 0x262   : > { %v407_v16 = vpop.permute.xlu0 %406  ;;  %v410_v17 = vpop.permute.xlu1 %409  ;;  %v451_v20 = vsel %vm450_vm5, %v434_v13, %v449_v15 }
 0x263   : > { %v438_v18 = vrot.slane %v407_v16, %v893_v33  ;;  %v442_v19 = vrot.slane %v410_v17, %v893_v33 }
 0x265   : > { %v453_v21 = vsel %vm452_vm6, %v438_v18, %v451_v20 }
 0x266   : > { %v455_v22 = vsel %vm454_vm7, %v442_v19, %v453_v21  ;;  %v468_v24 = vpop.permute.xlu1 %467 }
 0x267   : > { %v458_v23 = vsel %vm457_vm8, %v455_v22, 0.0 }
 0x268   : > { %459 = vadd.xlane.f32.xlu0 %v458_v23 }
 0x2f1   : > { %v460_v25 = vpop.xlane.xlu0 %459 }
 0x2f2   : > { %v470_v26 = vadd.f32 %v468_v24, %v460_v25 }
 0x2f4   : > { %v582_v27 = vmul.f32 -1.442695, %v470_v26 }
 0x2f6   : > { %639 = vpow2.f32 %v582_v27 }
 0x303   : > { %v640_v28 = vpop.eup %639 }
 0x304   : > { %v474_v29 = vadd.f32 1.0, %v640_v28 }
 0x306   : > { %641 = vrcp.f32 %v474_v29 }
 0x313   : > { %v642_v30 = vpop.eup %641 }
 0x314   : > { %479 = vperm.xlu1 %637, %v642_v30  }
 0x38f   : > { %v480_v31 = vpop.permute.xlu1 %479 }
 0x390   : > { %v482_v32 = vmul.f32 %v480_v31, %v878_v3  ;;  %v483_v33 = vmul.f32 %v480_v31, %v880_v4 }
 0x392   : > { %484 = vst [vmem:[%s240_s9] sm:$0xff] %v482_v32  ;;  %485 = vst [vmem:[%s240_s9 + $0x8] sm:$0xff] %v483_v33 }
 0x393   : > { %684 = shalt.err (!%p681_p10)
}
 0x394   : > { %s685_s16 = scalar_lea.hbm %s918_s15, 256  ;;  %s689_s26 = scalar_lea.hbm %s960_s5, 512 }
 0x395   : > { %p686_p2 = scmp.ne.s32.totalorder %s918_s15, %s685_s16  ;;  %p690_p7 = scmp.lt.s32.totalorder %s918_s15, %s960_s5 }
 0x396   : > { %p691_p0 = scmp.lt.s32.totalorder %s689_s26, %s685_s16 }
 0x397   : > { %p687_p4 = pnand %p686_p2, %p971_p12 }
 0x398   : > { %p692_p6 = por %p691_p0, %p690_p7 }
 0x399   : > { %p688_p9 = pneg %p687_p4 }
 0x39b   : > { %p693_p11 = pnand %p692_p6, %p688_p9 }
 0x39d   : > { %696 = shalt.err (!%p693_p11)
}
 0x39e   : > { %592 = dma.vmem_to_hbm [thread:$0]  (%p971_p12), %s502_s10, 256, %s918_s15, %s487_s12  }
 0x39f PF: > { %s513_s7 = sand.u32 1, %s723_s18   ;;  %p972_p13 = scmp.ne.s32.totalorder %s966_s6, 0 }
 0x3a0   : > { %p973_p1 = scmp.ge.s32.totalorder %s735_s21, 2  ;;  %s514_s9 = scalar_lea.sflag [#allocation4], %s513_s7 }
 0x3a2   : > { %p599_p3 = pnand %p973_p1, %p972_p13 }
 0x3a4   : > { %p600_p5 = pneg %p599_p3 }
 0x3a6   : > { %718 = dma.done.wait (%p600_p5), %s514_s9, 256  }
 0x3a7   : > { %720 = vsyncadd (%p600_p5), %s514_s9, 4294967040  ;;  %p18_p8 = scmp.ge.s32.totalorder %s795_s24, 4   ;;  %s974_s18 = smov %s727_s19 }
 0x3a8   : > { %s975_s19 = smov %s731_s20  ;;  %s976_s20 = smov %s807_s27 }
 0x3a9   : > { %s977_s21 = smov %s795_s24  ;;  %20 = sbr.rel (!%p18_p8) target bundleno = 5 (0x5), region = 85 }
 0x3ae   :  { %519 = vsyncpa [#allocation3], 1 }
 0x3af   :  { %521 = vsyncpa [#allocation3 + $0x1], 1 }
 0x3b0   :  { %522 = vsyncpa [#allocation4], 1 }
 0x3b1   :  { %524 = vsyncpa [#allocation4 + $0x1], 1 }

</bundles_post_ra>
